<compile_context>
chip_gen: v6e
topology: v6e:2x2x1
jax: 0.10.0
libtpu: 0.0.40
codegen_flags: <defaults>
</compile_context>

<pallas_src>
import functools

import jax
import jax.numpy as jnp
from jax import lax
from jax.experimental import pallas as pl
from jax.experimental.pallas import tpu as pltpu


def _round_up(x: int, m: int) -> int:
    return ((x + m - 1) // m) * m


def _custom_loss_kernel(x_ref, y_ref, o_ref, gdiff_ref, l1_ref, *,
                        style_scale: float, l1_scale: float,
                        b: int, tb: int, needs_mask: bool, gram_dtype):
    k = pl.program_id(0)

    @pl.when(k == 0)
    def _init():
        gdiff_ref[...] = jnp.zeros_like(gdiff_ref)
        l1_ref[...] = jnp.zeros_like(l1_ref)

    x = x_ref[...]
    y = y_ref[...]

    if needs_mask:
        # Ragged tail handled in-kernel (no host-side jnp.pad).  Pallas does
        # NOT zero-fill out-of-bounds block reads, so garbage lanes of the
        # last tile must be zeroed before the Gram / L1 sums.  Zeroed lanes
        # contribute exactly 0 to both sums; the means divide by the ORIGINAL
        # a*b, so this is exact.
        col = lax.broadcasted_iota(jnp.int32, x.shape, 1)
        valid = col < (b - k * tb)
        x = jnp.where(valid, x, 0)
        y = jnp.where(valid, y, 0)

    # Gram partial sums on the MXU: contract the lane-major last dim of each
    # tile against itself (no explicit transpose / relayout).  Accumulate only
    # the *difference* of the two Gram matrices in f32.
    xg = x if gram_dtype is None else x.astype(gram_dtype)
    yg = y if gram_dtype is None else y.astype(gram_dtype)
    dn = (((1,), (1,)), ((), ()))
    gx = lax.dot_general(xg, xg, dimension_numbers=dn,
                         preferred_element_type=jnp.float32)
    gy = lax.dot_general(yg, yg, dimension_numbers=dn,
                         preferred_element_type=jnp.float32)
    gdiff_ref[...] += gx - gy

    # Elementwise L1 partial: |x - y| in the native dtype (packed bf16 VPU on
    # v6e/v7x; f32 stays f32), accumulated into a lane-resident (1, tb) f32
    # buffer.  Only a sublane reduce per tile; the single cross-lane reduce
    # and the scalar store happen once in the epilogue.
    d = jnp.abs(x - y).astype(jnp.float32)
    l1_ref[...] += jnp.sum(d, axis=0, keepdims=True)

    @pl.when(k == pl.num_programs(0) - 1)
    def _finalize():
        style = jnp.sum(jnp.abs(gdiff_ref[...])) * style_scale
        l1 = jnp.sum(l1_ref[...]) * l1_scale
        o_ref[0, 0] = style + l1


def custom_loss(x, y, *, block_b: int | None = None, gram_dtype=None):
    assert x.shape == y.shape and x.ndim == 2, "inputs must be same-shape 2-D"
    a, b = x.shape
    itemsize = jnp.dtype(x.dtype).itemsize

    # --- VMEM budgeting (per TensorCore) -----------------------------------
    try:
        vmem_cap = int(pltpu.get_tpu_info().vmem_capacity_bytes)
    except Exception:
        vmem_cap = 64 * 1024 * 1024   # conservative: v7x per-TC capacity
    # Target scoped-VMEM footprint; leave capacity headroom for Mosaic.
    vmem_target = min(int(vmem_cap * 0.75), 96 * 1024 * 1024)

    gram_acc_bytes = 4 * a * a            # (a, a) f32 Gram-difference acc
    headroom = 2 * 1024 * 1024            # l1 acc, output, internal scratch
    pipeline_budget = vmem_target - gram_acc_bytes - headroom
    min_pipeline = 4 * a * 128 * itemsize  # 2 inputs x 2 buffers x (a,128)
    if pipeline_budget < min_pipeline:
        # TODO(synk): a this large needs the 2-D-tiled Gram restructuring
        # (see header); fall back to the minimal lane-dense tile here.
        pipeline_budget = min_pipeline

    if block_b is None:
        tb = (pipeline_budget // (4 * a * itemsize)) // 128 * 128
        tb = max(128, int(tb))
    else:
        tb = max(128, (block_b // 128) * 128)
    tb = min(tb, _round_up(b, 128))       # never allocate more than needed

    num_k = pl.cdiv(b, tb)
    needs_mask = (b % tb) != 0

    # Scoped VMEM limit derived from the actual usage estimate.
    est_bytes = 2 * 2 * a * tb * itemsize + gram_acc_bytes + 4 * tb
    vmem_limit = min(vmem_cap, max(est_bytes + 4 * 1024 * 1024,
                                   32 * 1024 * 1024))

    style_scale = 1.0 / (float(a * b) * float(a * a))
    l1_scale = 1.0 / float(a * b)

    kernel = functools.partial(_custom_loss_kernel,
                               style_scale=style_scale,
                               l1_scale=l1_scale,
                               b=b, tb=tb,
                               needs_mask=needs_mask,
                               gram_dtype=gram_dtype)

    out = pl.pallas_call(
        kernel,
        out_shape=jax.ShapeDtypeStruct((1, 1), jnp.float32),
        grid_spec=pltpu.PrefetchScalarGridSpec(
            num_scalar_prefetch=0,
            grid=(num_k,),
            in_specs=[
                pl.BlockSpec((a, tb), lambda k: (0, k)),
                pl.BlockSpec((a, tb), lambda k: (0, k)),
            ],
            out_specs=pl.BlockSpec((1, 1), lambda k: (0, 0),
                                   memory_space=pltpu.SMEM),
            scratch_shapes=[
                pltpu.VMEM((a, a), jnp.float32),   # Gram-difference accumulator
                pltpu.VMEM((1, tb), jnp.float32),  # lane-resident L1 accumulator
            ],
        ),
        compiler_params=pltpu.CompilerParams(
            dimension_semantics=("arbitrary",),
            vmem_limit_bytes=int(vmem_limit),
        ),
    )(x, y)
    return out[0, 0]


def _reference(x, y):
    a, b = x.shape
    xf = x.astype(jnp.float32)
    yf = y.astype(jnp.float32)
    gx = (xf @ xf.T) / (a * b)
    gy = (yf @ yf.T) / (a * b)
    return jnp.mean(jnp.abs(gx - gy)) + jnp.mean(jnp.abs(xf - yf))


if __name__ == "__main__":
    key = jax.random.PRNGKey(0)

    # Case 1: b divisible by the tile -> multi-step reduction grid, no mask.
    k1, k2, key = jax.random.split(key, 3)
    a1, b1 = 8, 1024
    x1 = jax.random.normal(k1, (a1, b1), dtype=jnp.float32)
    y1 = jax.random.normal(k2, (a1, b1), dtype=jnp.float32)
    loss1 = custom_loss(x1, y1, block_b=256)
    jax.block_until_ready(loss1)
    ref1 = _reference(x1, y1)
    assert jnp.allclose(loss1, ref1, rtol=1e-5, atol=1e-5), (loss1, ref1)

    # Case 2: b not a multiple of 128 -> single step, in-kernel tail mask.
    k3, k4, key = jax.random.split(key, 3)
    a2, b2 = 16, 1000
    x2 = jax.random.normal(k3, (a2, b2), dtype=jnp.float32)
    y2 = jax.random.normal(k4, (a2, b2), dtype=jnp.float32)
    loss2 = custom_loss(x2, y2)
    jax.block_until_ready(loss2)
    ref2 = _reference(x2, y2)
    assert jnp.allclose(loss2, ref2, rtol=1e-5, atol=1e-5), (loss2, ref2)

    # Case 3: multi-step grid with a ragged tail tile (b % tb != 0).
    k5, k6, _ = jax.random.split(key, 3)
    a3, b3 = 8, 1000
    x3 = jax.random.normal(k5, (a3, b3), dtype=jnp.float32)
    y3 = jax.random.normal(k6, (a3, b3), dtype=jnp.float32)
    loss3 = custom_loss(x3, y3, block_b=256)
    jax.block_until_ready(loss3)
    ref3 = _reference(x3, y3)
    assert jnp.allclose(loss3, ref3, rtol=1e-5, atol=1e-5), (loss3, ref3)

    print("KERNEL_OK")
</pallas_src>

<mosaic_0001>
module attributes {stable_mosaic.version = 11 : i64} {
  func.func @_custom_loss_kernel(%arg0: i32, %arg1: memref<8x256xf32, #tpu.memory_space<vmem>>, %arg2: memref<8x256xf32, #tpu.memory_space<vmem>>, %arg3: memref<1x1xf32, #tpu.memory_space<smem>>, %arg4: memref<8x8xf32, #tpu.memory_space<vmem>>, %arg5: memref<1x256xf32, #tpu.memory_space<vmem>>) attributes {dimension_semantics = [#tpu.dimension_semantics<arbitrary>], iteration_bounds = array<i64: 4>, scalar_prefetch = 0 : i64, scratch_operands = 2 : i64, tpu.core_type = #tpu.core_type<tc>, window_params = [{transform_indices = @transform_0, window_bounds = array<i64: 8, 256>}, {transform_indices = @transform_1, window_bounds = array<i64: 8, 256>}, {transform_indices = @transform_2, window_bounds = array<i64: 1, 1>}]} {
    %c0_i32 = arith.constant 0 : i32
    %0 = arith.cmpi eq, %arg0, %c0_i32 : i32
    %1 = arith.extui %0 : i1 to i32
    %c0_i32_0 = arith.constant 0 : i32
    %2 = arith.cmpi ne, %1, %c0_i32_0 : i32
    scf.if %2 {
      %cst_15 = arith.constant 0.000000e+00 : f32
      %21 = vector.broadcast %cst_15 : f32 to vector<8x8xf32>
      %c0_16 = arith.constant 0 : index
      %c0_17 = arith.constant 0 : index
      %22 = vector.load %arg4[%c0_16, %c0_17] : memref<8x8xf32, #tpu.memory_space<vmem>>, vector<8x8xf32>
      tpu.vector_store %arg4[%c0_16, %c0_17], %21 {strides = array<i32>} : memref<8x8xf32, #tpu.memory_space<vmem>>, vector<8x8xf32>,
      %cst_18 = arith.constant 0.000000e+00 : f32
      %23 = vector.broadcast %cst_18 : f32 to vector<1x256xf32>
      %c0_19 = arith.constant 0 : index
      %c0_20 = arith.constant 0 : index
      %24 = vector.load %arg5[%c0_19, %c0_20] : memref<1x256xf32, #tpu.memory_space<vmem>>, vector<1x256xf32>
      tpu.vector_store %arg5[%c0_19, %c0_20], %23 {strides = array<i32>} : memref<1x256xf32, #tpu.memory_space<vmem>>, vector<1x256xf32>,
    } else {
    }
    %c0 = arith.constant 0 : index
    %c0_1 = arith.constant 0 : index
    %3 = vector.load %arg1[%c0, %c0_1] : memref<8x256xf32, #tpu.memory_space<vmem>>, vector<8x256xf32>
    %c0_2 = arith.constant 0 : index
    %c0_3 = arith.constant 0 : index
    %4 = vector.load %arg2[%c0_2, %c0_3] : memref<8x256xf32, #tpu.memory_space<vmem>>, vector<8x256xf32>
    %cst = arith.constant dense<0.000000e+00> : vector<8x8xf32>
    %5 = tpu.matmul %3, %3, %cst {dimension_numbers = #tpu.dot_dimension_numbers<[1], [1], [0], [0], [0, 0, 1, 0], [], []>} : vector<8x256xf32>, vector<8x256xf32>, vector<8x8xf32> -> vector<8x8xf32>
    %cst_4 = arith.constant dense<0.000000e+00> : vector<8x8xf32>
    %6 = tpu.matmul %4, %4, %cst_4 {dimension_numbers = #tpu.dot_dimension_numbers<[1], [1], [0], [0], [0, 0, 1, 0], [], []>} : vector<8x256xf32>, vector<8x256xf32>, vector<8x8xf32> -> vector<8x8xf32>
    %c0_5 = arith.constant 0 : index
    %c0_6 = arith.constant 0 : index
    %7 = vector.load %arg4[%c0_5, %c0_6] : memref<8x8xf32, #tpu.memory_space<vmem>>, vector<8x8xf32>
    %8 = arith.subf %5, %6 : vector<8x8xf32>
    %9 = arith.addf %7, %8 : vector<8x8xf32>
    %c0_7 = arith.constant 0 : index
    %c0_8 = arith.constant 0 : index
    %10 = vector.load %arg4[%c0_7, %c0_8] : memref<8x8xf32, #tpu.memory_space<vmem>>, vector<8x8xf32>
    tpu.vector_store %arg4[%c0_7, %c0_8], %9 {strides = array<i32>} : memref<8x8xf32, #tpu.memory_space<vmem>>, vector<8x8xf32>,
    %11 = arith.subf %3, %4 : vector<8x256xf32>
    %12 = math.absf %11 : vector<8x256xf32>
    %c0_9 = arith.constant 0 : index
    %c0_10 = arith.constant 0 : index
    %13 = vector.load %arg5[%c0_9, %c0_10] : memref<1x256xf32, #tpu.memory_space<vmem>>, vector<1x256xf32>
    %cst_11 = arith.constant dense<0.000000e+00> : vector<256xf32>
    %14 = vector.multi_reduction <add>, %12, %cst_11 [0] : vector<8x256xf32> to vector<256xf32>
    %15 = vector.shape_cast %14 : vector<256xf32> to vector<1x256xf32>
    %16 = arith.addf %13, %15 : vector<1x256xf32>
    %c0_12 = arith.constant 0 : index
    %c0_13 = arith.constant 0 : index
    %17 = vector.load %arg5[%c0_12, %c0_13] : memref<1x256xf32, #tpu.memory_space<vmem>>, vector<1x256xf32>
    tpu.vector_store %arg5[%c0_12, %c0_13], %16 {strides = array<i32>} : memref<1x256xf32, #tpu.memory_space<vmem>>, vector<1x256xf32>,
    %c3_i32 = arith.constant 3 : i32
    %18 = arith.cmpi eq, %arg0, %c3_i32 : i32
    %19 = arith.extui %18 : i1 to i32
    %c0_i32_14 = arith.constant 0 : i32
    %20 = arith.cmpi ne, %19, %c0_i32_14 : i32
    scf.if %20 {
      %c0_15 = arith.constant 0 : index
      %c0_16 = arith.constant 0 : index
      %21 = vector.load %arg4[%c0_15, %c0_16] : memref<8x8xf32, #tpu.memory_space<vmem>>, vector<8x8xf32>
      %22 = math.absf %21 : vector<8x8xf32>
      %23 = vector.shape_cast %22 : vector<8x8xf32> to vector<1x8x8xf32>
      %cst_17 = arith.constant dense<0.000000e+00> : vector<1xf32>
      %24 = vector.multi_reduction <add>, %23, %cst_17 [1, 2] : vector<1x8x8xf32> to vector<1xf32>
      %25 = vector.shape_cast %24 : vector<1xf32> to vector<1x1x1xf32>
      %26 = vector.extract %25[0, 0, 0] : f32 from vector<1x1x1xf32>
      %cst_18 = arith.constant 1.90734863E-6 : f32
      %27 = arith.mulf %26, %cst_18 : f32
      %c0_19 = arith.constant 0 : index
      %c0_20 = arith.constant 0 : index
      %28 = vector.load %arg5[%c0_19, %c0_20] : memref<1x256xf32, #tpu.memory_space<vmem>>, vector<1x256xf32>
      %29 = vector.shape_cast %28 : vector<1x256xf32> to vector<1x1x256xf32>
      %cst_21 = arith.constant dense<0.000000e+00> : vector<1xf32>
      %30 = vector.multi_reduction <add>, %29, %cst_21 [1, 2] : vector<1x1x256xf32> to vector<1xf32>
      %31 = vector.shape_cast %30 : vector<1xf32> to vector<1x1x1xf32>
      %32 = vector.extract %31[0, 0, 0] : f32 from vector<1x1x1xf32>
      %cst_22 = arith.constant 1.22070313E-4 : f32
      %33 = arith.mulf %32, %cst_22 : f32
      %34 = arith.addf %27, %33 : f32
      %c0_23 = arith.constant 0 : index
      %c0_24 = arith.constant 0 : index
      %35 = memref.load %arg3[%c0_23, %c0_24] : memref<1x1xf32, #tpu.memory_space<smem>>
      memref.store %34, %arg3[%c0_23, %c0_24] : memref<1x1xf32, #tpu.memory_space<smem>>
    } else {
    }
    return
  }
  func.func @transform_0(%arg0: i32) -> (i32, i32) {
    %c0_i32 = arith.constant 0 : i32
    %c0_i32_0 = arith.constant 0 : i32
    return %c0_i32, %arg0 : i32, i32
  }
  func.func @transform_1(%arg0: i32) -> (i32, i32) {
    %c0_i32 = arith.constant 0 : i32
    %c0_i32_0 = arith.constant 0 : i32
    return %c0_i32, %arg0 : i32, i32
  }
  func.func @transform_2(%arg0: i32) -> (i32, i32) {
    %c0_i32 = arith.constant 0 : i32
    %c0_i32_0 = arith.constant 0 : i32
    %c0_i32_1 = arith.constant 0 : i32
    return %c0_i32, %c0_i32_0 : i32, i32
  }
}

</mosaic_0001>

<bundles_post_ra>
// kernel: tpu_custom_call.1
= control target key start
LH: loop header
LB: loop body
LE: loop exit
PB: predicated region body
PF: predicated region fallthrough
CT: control target
= control target key end

     0   :  { %7 = vsyncpa [#allocation5], 0  ;;  %s874_s0 = inlined_call_operand.hbm [shape: f32[8,1024], index: 0, kind: input, shape index: {}]   ;;  %s875_s1 = inlined_call_operand.hbm [shape: f32[8,1024], index: 1, kind: input, shape index: {}]   ;;  %s876_s2 = inlined_call_operand.hbm [shape: f32[1,1], index: 2, kind: output, shape index: {}]  }
   0x1   :  { %9 = vsyncpa [#allocation5 + $0x1], 0 }
   0x2   :  { %10 = vsyncpa [#allocation8], 0 }
   0x3   :  { %12 = vsyncpa [#allocation8 + $0x1], 0 }
   0x4   :  { %13 = vsyncpa [#allocation6], 0  ;;  %s721_s9 = smov 0   ;;  %s723_s10 = smov 0  }
   0x5   :  { %s725_s11 = smov 0   ;;  %s727_s12 = smov 0  }
   0x6 LB: > { %s740_s13 = sadd.s32 4294967295, %s699_s12   ;;  %s743_s14 = sadd.s32 1, %s699_s12   ;;  %s699_s12 = sphi %s727_s12, %s888_s12   ;;  %s695_s11 = sphi %s725_s11, %s887_s11   ;;  %s691_s10 = sphi %s723_s10, %s886_s10   ;;  %s687_s9 = sphi %s721_s9, %s885_s9  }
   0x7   : > { %s23_s15 = ssub.s32 %s699_s12, %s743_s14  ;;  %s26_s16 = sadd.s32 1, %s695_s11 }
   0x8   : > { %p24_p0 = scmp.eq.s32.totalorder %s23_s15, 0  ;;  %p33_p1 = scmp.ne.s32.totalorder %s695_s11, %s691_s10 }
   0x9   : > { %p34_p2 = scmp.eq.s32.totalorder %s699_s12, 0  ;;  %p39_p3 = scmp.ne.s32.totalorder %s691_s10, %s687_s9 }
   0xa   : > { %s753_s17 = scalar_select %p24_p0, %s695_s11, %s26_s16  }
   0xb   : > { %p35_p4 = por %p34_p2, %p33_p1  ;;  %p40_p5 = scmp.eq.s32.totalorder %s740_s13, 0 }
   0xc   : > { %p553_p6 = scmp.lt.s32.totalorder %s699_s12, 4  ;;  %s762_s19 = sand.u32 1, %s695_s11  }
   0xd   : > { %p757_p7 = por %p40_p5, %p39_p3  ;;  %s517_s20 = sshll.u32 %s762_s19, 4 }
   0xe   : > { %s532_s21 = sshll.u32 %s699_s12, 8  ;;  %s114_s25 = scalar_lea.vmem [#allocation4], %s517_s20 }
   0xf   : > { %s878_s18 = scalar_select %p757_p7, 1, 0 }
  0x10   : > { %s771_s24 = scalar_lea.hbm %s874_s0, %s532_s21  ;;  %s122_s26 = sshll.u32 %s114_s25, 4  ;;  %s775_s26 = int_to_ptr.vmem [resolvable:$true] %s122_s26 }
  0x11   : > { %p777_p8 = pnand %p553_p6, %p35_p4  ;;  %s111_s28 = scalar_lea.sflag [#allocation5], %s762_s19 }
  0x12   : > { %s591_s29 = scalar_lea.hbm %s771_s24, 256  ;;  %s596_s4 = scalar_lea.hbm %s874_s0, 1024 }
  0x13   : > { %p592_p11 = scmp.ne.s32.totalorder %s771_s24, %s591_s29  ;;  %p593_p12 = pneg %p777_p8 }
  0x14   : > { %p597_p1 = scmp.lt.s32.totalorder %s771_s24, %s874_s0  ;;  %p598_p2 = scmp.lt.s32.totalorder %s596_s4, %s591_s29 }
  0x15   : > { %p594_p13 = pnand %p593_p12, %p592_p11 }
  0x16   : > { %p599_p3 = por %p598_p2, %p597_p1 }
  0x17   : > { %p595_p0 = pneg %p594_p13 }
  0x19   : > { %p600_p4 = pnand %p599_p3, %p595_p0 }
  0x1b   : > { %603 = shalt.err (!%p600_p4)
}
  0x1c   : > { %s604_s7 = scalar_lea.vmem %s775_s26, 256  ;;  %s701_s8 = smov [#allocation4]  }
  0x1d   : > { %p605_p5 = scmp.ne.s32.totalorder %s775_s26, %s604_s7  ;;  %s609_s9 = sshll.u32 %s701_s8, 4  ;;  %s610_s9 = int_to_ptr.vmem [resolvable:$false] %s609_s9 }
  0x1e   : > { %s611_s15 = scalar_lea.vmem %s610_s9, 512  ;;  %p612_p13 = scmp.lt.s32.totalorder %s775_s26, %s610_s9 }
  0x1f   : > { %p607_p6 = pnand %p605_p5, %p593_p12  ;;  %p613_p9 = scmp.lt.s32.totalorder %s611_s15, %s604_s7 }
  0x21   : > { %p608_p11 = pneg %p607_p6  ;;  %p614_p10 = por %p613_p9, %p612_p13 }
  0x23   : > { %p615_p1 = pnand %p614_p10, %p608_p11 }
  0x25   : > { %618 = shalt.err (!%p615_p1)
}
  0x26   : > { %549 = dma.hbm_to_vmem [thread:$0]  (!%p777_p8), %s771_s24, 256, %s775_s26, %s111_s28  }
  0x27   : > { %p880_p0 = scmp.lt.s32.totalorder %s699_s12, 5  ;;  %p881_p2 = scmp.ge.s32.totalorder %s699_s12, 1 }
  0x28   : > { %s821_s25 = scalar_lea.hbm %s875_s1, %s532_s21  ;;  %s133_s29 = scalar_lea.vmem [#allocation7], %s517_s20 }
  0x29   : > { %p812_p3 = pnand %p881_p2, %p880_p0  ;;  %s141_s30 = sshll.u32 %s133_s29, 4  ;;  %s142_s30 = int_to_ptr.vmem [resolvable:$true] %s141_s30 }
  0x2a   : > { %s130_s24 = scalar_lea.sflag [#allocation8], %s762_s19  ;;  %s619_s26 = scalar_lea.hbm %s821_s25, 256 }
  0x2b   : > { %s882_s16 = scalar_select %p812_p3, 1, 0 }
  0x2c   : > { %p620_p9 = scmp.ne.s32.totalorder %s821_s25, %s619_s26  ;;  %s624_s3 = scalar_lea.hbm %s875_s1, 1024 }
  0x2d   : > { %p625_p5 = scmp.lt.s32.totalorder %s821_s25, %s875_s1  ;;  %p626_p6 = scmp.lt.s32.totalorder %s624_s3, %s619_s26 }
  0x2e   : > { %p622_p10 = pnand %p620_p9, %p593_p12 }
  0x2f   : > { %p627_p11 = por %p626_p6, %p625_p5 }
  0x30   : > { %p623_p4 = pneg %p622_p10 }
  0x32   : > { %p628_p13 = pnand %p627_p11, %p623_p4 }
  0x34   : > { %631 = shalt.err (!%p628_p13)
}
  0x35   : > { %s632_s20 = scalar_lea.vmem %s142_s30, 256  ;;  %s702_s19 = smov [#allocation7]  }
  0x36   : > { %p633_p1 = scmp.ne.s32.totalorder %s142_s30, %s632_s20  ;;  %s637_s5 = sshll.u32 %s702_s19, 4  ;;  %s638_s5 = int_to_ptr.vmem [resolvable:$false] %s637_s5 }
  0x37   : > { %s639_s6 = scalar_lea.vmem %s638_s5, 512  ;;  %p640_p9 = scmp.lt.s32.totalorder %s142_s30, %s638_s5 }
  0x38   : > { %p635_p0 = pnand %p633_p1, %p593_p12  ;;  %p641_p10 = scmp.lt.s32.totalorder %s639_s6, %s632_s20 }
  0x3a   : > { %p636_p2 = pneg %p635_p0  ;;  %p642_p7 = por %p641_p10, %p640_p9 }
  0x3c   : > { %p643_p3 = pnand %p642_p7, %p636_p2 }
  0x3e   : > { %646 = shalt.err (!%p643_p3)
}
  0x3f   : > { %552 = dma.hbm_to_vmem [thread:$0]  (!%p777_p8), %s821_s25, 256, %s142_s30, %s130_s24  }
  0x40   : > { %p883_p4 = scmp.ne.s32.totalorder %s882_s16, 0 }
  0x41   : > { %s152_s7 = sand.u32 (!%p883_p4), 1, %s691_s10   ;;  %p884_p12 = scmp.ne.s32.totalorder (!%p883_p4), %s878_s18, 0 }
  0x42   : > { %150 = sbr.rel (%p883_p4) target bundleno = 514 (0x202), region = 28  ;;  %s524_s8 = sshll.u32 (!%p883_p4), %s152_s7, 4 }
  0x43   : > { %s153_s9 = scalar_lea.sflag (!%p883_p4), [#allocation5], %s152_s7  ;;  %s156_s15 = scalar_lea.vmem (!%p883_p4), [#allocation4], %s524_s8 }
  0x47   : > { %674 = dma.done.wait (%p884_p12), %s153_s9, 256  }
  0x48   : > { %676 = vsyncadd (%p884_p12), %s153_s9, 4294967040  ;;  %s162_s22 = scalar_lea.sflag [#allocation8], %s152_s7  ;;  %s165_s23 = scalar_lea.vmem [#allocation7], %s524_s8 }
  0x49   : > { %678 = dma.done.wait (%p884_p12), %s162_s22, 256  }
  0x4a   : > { %680 = vsyncadd (%p884_p12), %s162_s22, 4294967040  ;;  %p526_p7 = scmp.ne.s32.totalorder %s740_s13, 0 }
  0x4c   : > { %191 = sbr.rel (%p526_p7) target bundleno = 85 (0x55), region = 40 }
  0x51   : > { %vm192_vm0 = vcmask 64512   ;;  %v194_v0 = vlaneseq  ;;  %v703_v1 = vmov 0.0  }
  0x52   : > { %193 = vst.msk [vmem:[#allocation2] sm:$0xff] %vm192_vm0, %v703_v1 }
  0x53   : > { %vm196_vm1 = vcmp.lt.s32.totalorder %v194_v0, 256 }
  0x54   : > { %198 = vst.msk [vmem:[#allocation3] sm:$0x3] %vm196_vm1, %v703_v1 }
  0x55 PF: > { %v200_v2 = vld [vmem:[%s156_s15 + $0x8] sm:$0xff]  ;;  %v199_v4 = vld [vmem:[%s156_s15] sm:$0xff]  ;;  %v704_v14 = vmov 1966171168   ;;  %v371_v16 = vlaneseq  ;;  %vm346_vm3 = vcmask 64512   ;;  %p527_p8 = scmp.ne.s32.totalorder %s740_s13, 3 }
  0x56   : > { %v202_v3 = vld [vmem:[%s165_s23 + $0x8] sm:$0xff]  ;;  %233 = vmatprep.subr.mxu0 %v200_v2  ;;  %v201_v6 = vld [vmem:[%s165_s23] sm:$0xff]  ;;  %267 = vmatprep.mubr.f32.mxu0 %v200_v2  ;;  %v369_v15 = vunpack.c.l.s4 %v704_v14 }
  0x57   : > { %303 = vmatprep.subr.mxu1 %v202_v3  ;;  %v349_v5 = vsub.f32 %v200_v2, %v202_v3  ;;  %234 = vmatpush1.xpose.msra.mxu0 %v199_v4  ;;  %v348_v7 = vsub.f32 %v199_v4, %v201_v6  ;;  %v372_v22 = vshrl.u32 %v371_v16, 7  ;;  %vm386_vm2 = vcmp.lt.s32.totalorder %v371_v16, 256 }
  0x58   : > { %304 = vmatpush1.xpose.msra.mxu1 %v201_v6  ;;  %337 = vmatprep.mubr.f32.mxu1 %v202_v3  ;;  %v370_v21 = vunpack.c.0.s8 %v369_v15 }
  0x59   : > { %v351_v8 = vand.u32 2147483647, %v349_v5  ;;  %v350_v9 = vand.u32 2147483647, %v348_v7  ;;  %v343_v35 = vld [vmem:[#allocation2] sm:$0xff] }
  0x5a   : > { %268 = vmatmul.mubr.f32.vlgmr.msra.gmra.mxu0 %v199_v4  ;;  %v373_v27 = vsub.s32 %v370_v21, %v372_v22 }
  0x5b   : > { %v359_v10 = vrot.slane %v351_v8, 4  ;;  %338 = vmatmul.mubr.f32.vlgmr.msra.gmra.mxu1 %v201_v6  ;;  %v353_v11 = vrot.slane %v350_v9, 4  ;;  %v352_v30 = vld [vmem:[#allocation3] sm:$0x3] }
  0x5d   : > { %v360_v12 = vadd.f32 %v359_v10, %v351_v8  ;;  %v354_v13 = vadd.f32 %v353_v11, %v350_v9 }
  0x5f   : > { %v361_v17 = vrot.slane %v360_v12, 2  ;;  %v355_v18 = vrot.slane %v354_v13, 2 }
  0x61   : > { %v362_v19 = vadd.f32 %v361_v17, %v360_v12  ;;  %v356_v20 = vadd.f32 %v355_v18, %v354_v13 }
  0x63   : > { %v363_v23 = vrot.slane %v362_v19, 1  ;;  %v357_v24 = vrot.slane %v356_v20, 1 }
  0x65   : > { %v364_v25 = vadd.f32 %v363_v23, %v362_v19  ;;  %v358_v26 = vadd.f32 %v357_v24, %v356_v20 }
  0x67   : > { %v367_v28 = vcombine.low %v358_v26, %v364_v25 }
  0x69   : > { %v374_v29 = vrot.slane %v367_v28, %v373_v27 }
  0x6b   : > { %v381_v31 = vrot.slane %v374_v29, %v373_v27 }
  0x6d   : > { %v383_v32 = vadd.f32 %v381_v31, %v352_v30 }
  0x6f   : > { %388 = vst.msk [vmem:[#allocation3] sm:$0x3] %vm386_vm2, %v383_v32 }
 0x11a   : > { %v269_v33 = vpop.f32.mrf.mxu0 }
 0x11b   : > { %v339_v34 = vpop.f32.mrf.mxu1 }
 0x11c   : > { %v344_v36 = vsub.f32 %v269_v33, %v339_v34  ;;  %v271_v37 = vpop.f32.mrf.mxu0  ;;  %392 = sbr.rel (%p527_p8) target bundleno = 508 (0x1fc), region = 44 }
 0x11d   : > { %v341_v38 = vpop.f32.mrf.mxu1 }
 0x11e   : > { %v345_v39 = vadd.f32 %v344_v36, %v343_v35 }
 0x120   : > { %347 = vst.msk [vmem:[#allocation2] sm:$0xff] %vm346_vm3, %v345_v39 }
 0x121   : > { %v406_v41 = vld [vmem:[#allocation3] sm:$0x3]  ;;  %v410_v42 = vsub.s32 0, %v372_v22  ;;  %v414_v43 = vsub.s32 1, %v372_v22  ;;  %vm418_vm4 = vcmask 1040384  }
 0x123   : > { %v411_v45 = vrot.slane %v406_v41, %v410_v42  ;;  %v415_v46 = vrot.slane %v406_v41, %v414_v43 }
 0x125   : > { %v419_v48 = vsel %vm418_vm4, %v411_v45, 0.0  ;;  %v420_v49 = vsel %vm418_vm4, %v415_v46, 0.0 }
 0x126   : > { %v421_v50 = vadd.f32 %v420_v49, %v419_v48 }
 0x127   : > { %v393_v40 = vld [vmem:[#allocation2] sm:$0xff] }
 0x128   : > { %v394_v44 = vand.u32 2147483647, %v393_v40 }
 0x12a   : > { %v395_v47 = vsel %vm346_vm3, %v394_v44, 0.0 }
 0x12b   : > { %396 = vadd.xlane.f32.xlu0 %v395_v47 }
 0x12f   : > { %422 = vadd.xlane.f32.xlu0 %v421_v50 }
 0x1b4   : > { %v397_v51 = vpop.xlane.xlu0 %396 }
 0x1b5   : > { %v398_v52 = vrot.slane %v397_v51, 4 }
 0x1b7   : > { %v399_v53 = vadd.f32 %v398_v52, %v397_v51 }
 0x1b8   : > { %v423_v54 = vpop.xlane.xlu0 %422 }
 0x1b9   : > { %v400_v55 = vrot.slane %v399_v53, 2  ;;  %v424_v56 = vrot.slane %v423_v54, 4 }
 0x1bb   : > { %v425_v57 = vadd.f32 %v424_v56, %v423_v54  ;;  %v401_v58 = vadd.f32 %v400_v55, %v399_v53 }
 0x1bd   : > { %v426_v59 = vrot.slane %v425_v57, 2  ;;  %v402_v60 = vrot.slane %v401_v58, 1 }
 0x1bf   : > { %v427_v61 = vadd.f32 %v426_v59, %v425_v57  ;;  %v403_v62 = vadd.f32 %v402_v60, %v401_v58 }
 0x1c1   : > { %534 = vpush %v403_v62  ;;  %v428_v63 = vrot.slane %v427_v61, 1 }
 0x1c3   : > { %v429_v0 = vadd.f32 %v428_v63, %v427_v61 }
 0x1c5   : > { %536 = vpush %v429_v0 }
 0x1f2   : > { %s535_s18 = spop %534 }
 0x1f3   : > { %s405_s27 = smul.f32 1.9073486e-06, %s535_s18 }
 0x1f6   : > { %s537_s16 = spop %536 }
 0x1f7   : > { %s431_s25 = smul.f32 0.00012207031, %s537_s16 }
 0x1f9   : > { %s432_s29 = sadd.f32 %s431_s25, %s405_s27 }
 0x1fb   : > { %434 = sst [smem:[#allocation9]] %s432_s29 }
 0x1fc PF: > { %p554_p3 = scmp.eq.s32.totalorder %s740_s13, 3  ;;  %s705_s30 = smov [#allocation9]  }
 0x1fe   : > { %543 = dma.smem_to_hbm (%p554_p3), %s705_s30, 16, %s876_s2, [#allocation6]  }
 0x1ff   : > { %682 = dma.done.wait (%p554_p3), [#allocation6], 16  }
 0x200   : > { %684 = vsyncadd (%p554_p3), [#allocation6], 4294967280 }
 0x201   : > { %448 = sfence }
 0x202 PF: > { %p16_p5 = scmp.ge.s32.totalorder %s743_s14, 6   ;;  %s885_s9 = smov %s691_s10 }
 0x203   : > { %s886_s10 = smov %s695_s11  ;;  %s887_s11 = smov %s753_s17 }
 0x204   : > { %s888_s12 = smov %s743_s14  ;;  %18 = sbr.rel (!%p16_p5) target bundleno = 6 (0x6), region = 87 }
 0x209   :  { %454 = vsyncpa [#allocation5], 1 }
 0x20a   :  { %456 = vsyncpa [#allocation5 + $0x1], 1 }
 0x20b   :  { %457 = vsyncpa [#allocation8], 1 }
 0x20c   :  { %459 = vsyncpa [#allocation8 + $0x1], 1 }
 0x20d   :  { %460 = vsyncpa [#allocation6], 1 }
 0x20e   :  { %462 = vsyncpa [#allocation6 + $0x1], 1 }

</bundles_post_ra>
